<compile_context>
chip_gen: v7x
topology: tpu7x:2x2x1
jax: 0.10.0
libtpu: 0.0.40
codegen_flags: <defaults>
</compile_context>

<pallas_src>
import functools

import jax
import jax.numpy as jnp
from jax.experimental import pallas as pl
from jax.experimental.pallas import tpu as pltpu

LANE = 128


def _round_up(x, m):
    return ((x + m - 1) // m) * m


def _cdiv(a, b):
    return (a + b - 1) // b


def _make_mlp_kernel(num_layers):
    """Build a kernel for an MLP in (features, batch) layout.

    refs = (x_ref, w1, b1, ..., wN, bN, out_ref); ReLU on all layers but the last.
    Weights are bf16 (MXU operands); accumulation, bias add and ReLU stay f32 (VPU).
    """

    def kernel(*refs):
        x_ref, out_ref = refs[0], refs[-1]
        wb = refs[1:-1]
        h = x_ref[...]                                    # (in_features, tile_b) f32
        for l in range(num_layers):
            w_ref, b_ref = wb[2 * l], wb[2 * l + 1]
            y = jnp.dot(w_ref[...], h.astype(w_ref.dtype),
                        preferred_element_type=jnp.float32) + b_ref[...]
            h = jnp.maximum(y, 0.0) if l < num_layers - 1 else y
        out_ref[...] = h.astype(out_ref.dtype)            # (out_features, tile_b)

    return kernel


@functools.partial(jax.jit, static_argnames=("block_b",))
def extended_dqn_forward(x, kernel_params, *, block_b=2048):
    """x: (batch, in_features) f32. kernel_params: tuple of (W [out,in] bf16, b [out,1] f32)
    from prepare_params(). Returns (batch, out_features) f32."""
    batch, in_features = x.shape
    num_layers = len(kernel_params)
    out_features = kernel_params[-1][0].shape[0]

    # --- batch tiling on the lane axis: tile is a multiple of 128 and <= block_b lanes;
    #     force >=2 grid steps whenever possible so both v7x TensorCores get work. ---
    padded0 = _round_up(batch, LANE)
    num_tiles = max(1, _cdiv(padded0, block_b))
    if num_tiles == 1 and padded0 >= 2 * LANE:
        num_tiles = 2
    tile_b = _round_up(_cdiv(padded0, num_tiles), LANE)
    padded_batch = num_tiles * tile_b

    # --- batch-on-lanes layout: (in_features, padded_batch); pad rows are zeros. ---
    xt = x.T
    if padded_batch != batch:
        xt = jnp.pad(xt, ((0, 0), (0, padded_batch - batch)))

    flat_args = [xt]
    in_specs = [pl.BlockSpec((in_features, tile_b), lambda i: (0, i))]
    for w, b in kernel_params:
        flat_args += [w, b]
        # Constant block index -> weights/biases stay resident in VMEM across steps.
        in_specs += [pl.BlockSpec(w.shape, lambda i: (0, 0)),
                     pl.BlockSpec(b.shape, lambda i: (0, 0))]
    out_spec = pl.BlockSpec((out_features, tile_b), lambda i: (0, i))

    out = pl.pallas_call(
        _make_mlp_kernel(num_layers),
        out_shape=jax.ShapeDtypeStruct((out_features, padded_batch), jnp.float32),
        grid=(num_tiles,),
        in_specs=in_specs,
        out_specs=out_spec,
        compiler_params=pltpu.CompilerParams(
            dimension_semantics=("parallel",)),   # batch tiles split across TCs on v7x
    )(*flat_args)

    # Un-pad and return in PyTorch's (batch, out_features) layout.
    return out[:, :batch].T


def init_params(key, input_size, hidden_sizes, output_size):
    """PyTorch nn.Linear-style init: W [out, in], b [out], uniform(±1/sqrt(fan_in))."""
    dims = [input_size] + list(hidden_sizes) + [output_size]
    params = []
    for i in range(len(dims) - 1):
        fan_in, fan_out = dims[i], dims[i + 1]
        key, kw, kb = jax.random.split(key, 3)
        bound = 1.0 / (fan_in ** 0.5)
        w = jax.random.uniform(kw, (fan_out, fan_in), jnp.float32, -bound, bound)
        b = jax.random.uniform(kb, (fan_out,), jnp.float32, -bound, bound)
        params.append((w, b))
    return params


def prepare_params(params, weight_dtype=jnp.bfloat16):
    """One-time conversion to kernel layout (hoisted out of the forward hot path):
    W stays [out, in] but is cast to bf16 for the MXU; b -> (out, 1) f32."""
    return tuple((w.astype(weight_dtype), b.reshape(-1, 1).astype(jnp.float32))
                 for w, b in params)


def reference_forward(x, kernel_params):
    """Pure-JAX reference with identical bf16-operand / f32-accumulate arithmetic,
    in the original (batch, features) layout."""
    h = x
    n = len(kernel_params)
    for i, (w, b) in enumerate(kernel_params):
        y = jnp.dot(h.astype(w.dtype), w.T,
                    preferred_element_type=jnp.float32) + b[:, 0]
        h = jnp.maximum(y, 0.0) if i < n - 1 else y
    return h


if __name__ == "__main__":
    key = jax.random.PRNGKey(0)

    input_size = 8
    hidden_sizes = [32, 32, 32, 32, 32]
    output_size = 4

    key, kp = jax.random.split(key)
    params = init_params(kp, input_size, hidden_sizes, output_size)
    kernel_params = prepare_params(params)   # bf16 cast / reshape done once, not per call

    # batch=2  -> single 128-lane tile (grid=(1,));
    # batch=512 -> two 256-lane tiles (grid=(2,), one per v7x TensorCore).
    for batch in (2, 512):
        key, kx = jax.random.split(key)
        x = jax.random.normal(kx, (batch, input_size), jnp.float32)

        out = jax.block_until_ready(extended_dqn_forward(x, kernel_params))
        ref = reference_forward(x, kernel_params)

        assert out.shape == (batch, output_size)
        assert jnp.allclose(out, ref, atol=1e-3, rtol=1e-3), \
            f"mismatch vs. pure-JAX reference at batch={batch}"

    print("KERNEL_OK")
</pallas_src>

<mosaic_0001>
module attributes {stable_mosaic.version = 11 : i64} {
  func.func @kernel(%arg0: i32, %arg1: memref<8x128xf32, #tpu.memory_space<vmem>>, %arg2: memref<32x8xbf16, #tpu.memory_space<vmem>>, %arg3: memref<32x1xf32, #tpu.memory_space<vmem>>, %arg4: memref<32x32xbf16, #tpu.memory_space<vmem>>, %arg5: memref<32x1xf32, #tpu.memory_space<vmem>>, %arg6: memref<32x32xbf16, #tpu.memory_space<vmem>>, %arg7: memref<32x1xf32, #tpu.memory_space<vmem>>, %arg8: memref<32x32xbf16, #tpu.memory_space<vmem>>, %arg9: memref<32x1xf32, #tpu.memory_space<vmem>>, %arg10: memref<32x32xbf16, #tpu.memory_space<vmem>>, %arg11: memref<32x1xf32, #tpu.memory_space<vmem>>, %arg12: memref<4x32xbf16, #tpu.memory_space<vmem>>, %arg13: memref<4x1xf32, #tpu.memory_space<vmem>>, %arg14: memref<4x128xf32, #tpu.memory_space<vmem>>) attributes {dimension_semantics = [#tpu.dimension_semantics<parallel>], iteration_bounds = array<i64: 1>, scalar_prefetch = 0 : i64, scratch_operands = 0 : i64, tpu.core_type = #tpu.core_type<tc>, window_params = [{transform_indices = @transform_0, window_bounds = array<i64: 8, 128>}, {pipeline_mode = #tpu.pipeline_mode<synchronous>, transform_indices = @transform_1, window_bounds = array<i64: 32, 8>}, {pipeline_mode = #tpu.pipeline_mode<synchronous>, transform_indices = @transform_2, window_bounds = array<i64: 32, 1>}, {pipeline_mode = #tpu.pipeline_mode<synchronous>, transform_indices = @transform_3, window_bounds = array<i64: 32, 32>}, {pipeline_mode = #tpu.pipeline_mode<synchronous>, transform_indices = @transform_4, window_bounds = array<i64: 32, 1>}, {pipeline_mode = #tpu.pipeline_mode<synchronous>, transform_indices = @transform_5, window_bounds = array<i64: 32, 32>}, {pipeline_mode = #tpu.pipeline_mode<synchronous>, transform_indices = @transform_6, window_bounds = array<i64: 32, 1>}, {pipeline_mode = #tpu.pipeline_mode<synchronous>, transform_indices = @transform_7, window_bounds = array<i64: 32, 32>}, {pipeline_mode = #tpu.pipeline_mode<synchronous>, transform_indices = @transform_8, window_bounds = array<i64: 32, 1>}, {pipeline_mode = #tpu.pipeline_mode<synchronous>, transform_indices = @transform_9, window_bounds = array<i64: 32, 32>}, {pipeline_mode = #tpu.pipeline_mode<synchronous>, transform_indices = @transform_10, window_bounds = array<i64: 32, 1>}, {pipeline_mode = #tpu.pipeline_mode<synchronous>, transform_indices = @transform_11, window_bounds = array<i64: 4, 32>}, {pipeline_mode = #tpu.pipeline_mode<synchronous>, transform_indices = @transform_12, window_bounds = array<i64: 4, 1>}, {transform_indices = @transform_13, window_bounds = array<i64: 4, 128>}]} {
    %c0 = arith.constant 0 : index
    %c0_0 = arith.constant 0 : index
    %0 = vector.load %arg1[%c0, %c0_0] : memref<8x128xf32, #tpu.memory_space<vmem>>, vector<8x128xf32>
    %c0_1 = arith.constant 0 : index
    %c0_2 = arith.constant 0 : index
    %1 = vector.load %arg2[%c0_1, %c0_2] : memref<32x8xbf16, #tpu.memory_space<vmem>>, vector<32x8xbf16>
    %2 = arith.truncf %0 : vector<8x128xf32> to vector<8x128xbf16>
    %cst = arith.constant dense<0.000000e+00> : vector<32x128xf32>
    %3 = tpu.matmul %1, %2, %cst {dimension_numbers = #tpu.dot_dimension_numbers<[1], [0], [0], [1], [0, 0, 1, 1], [], []>} : vector<32x8xbf16>, vector<8x128xbf16>, vector<32x128xf32> -> vector<32x128xf32>
    %c0_3 = arith.constant 0 : index
    %c0_4 = arith.constant 0 : index
    %4 = vector.load %arg3[%c0_3, %c0_4] : memref<32x1xf32, #tpu.memory_space<vmem>>, vector<32x1xf32>
    %5 = vector.broadcast %4 : vector<32x1xf32> to vector<32x128xf32>
    %6 = arith.addf %3, %5 : vector<32x128xf32>
    %cst_5 = arith.constant 0.000000e+00 : f32
    %7 = vector.broadcast %cst_5 : f32 to vector<32x128xf32>
    %8 = arith.maximumf %6, %7 : vector<32x128xf32>
    %c0_6 = arith.constant 0 : index
    %c0_7 = arith.constant 0 : index
    %9 = vector.load %arg4[%c0_6, %c0_7] : memref<32x32xbf16, #tpu.memory_space<vmem>>, vector<32x32xbf16>
    %10 = arith.truncf %8 : vector<32x128xf32> to vector<32x128xbf16>
    %cst_8 = arith.constant dense<0.000000e+00> : vector<32x128xf32>
    %11 = tpu.matmul %9, %10, %cst_8 {dimension_numbers = #tpu.dot_dimension_numbers<[1], [0], [0], [1], [0, 0, 1, 1], [], []>} : vector<32x32xbf16>, vector<32x128xbf16>, vector<32x128xf32> -> vector<32x128xf32>
    %c0_9 = arith.constant 0 : index
    %c0_10 = arith.constant 0 : index
    %12 = vector.load %arg5[%c0_9, %c0_10] : memref<32x1xf32, #tpu.memory_space<vmem>>, vector<32x1xf32>
    %13 = vector.broadcast %12 : vector<32x1xf32> to vector<32x128xf32>
    %14 = arith.addf %11, %13 : vector<32x128xf32>
    %cst_11 = arith.constant 0.000000e+00 : f32
    %15 = vector.broadcast %cst_11 : f32 to vector<32x128xf32>
    %16 = arith.maximumf %14, %15 : vector<32x128xf32>
    %c0_12 = arith.constant 0 : index
    %c0_13 = arith.constant 0 : index
    %17 = vector.load %arg6[%c0_12, %c0_13] : memref<32x32xbf16, #tpu.memory_space<vmem>>, vector<32x32xbf16>
    %18 = arith.truncf %16 : vector<32x128xf32> to vector<32x128xbf16>
    %cst_14 = arith.constant dense<0.000000e+00> : vector<32x128xf32>
    %19 = tpu.matmul %17, %18, %cst_14 {dimension_numbers = #tpu.dot_dimension_numbers<[1], [0], [0], [1], [0, 0, 1, 1], [], []>} : vector<32x32xbf16>, vector<32x128xbf16>, vector<32x128xf32> -> vector<32x128xf32>
    %c0_15 = arith.constant 0 : index
    %c0_16 = arith.constant 0 : index
    %20 = vector.load %arg7[%c0_15, %c0_16] : memref<32x1xf32, #tpu.memory_space<vmem>>, vector<32x1xf32>
    %21 = vector.broadcast %20 : vector<32x1xf32> to vector<32x128xf32>
    %22 = arith.addf %19, %21 : vector<32x128xf32>
    %cst_17 = arith.constant 0.000000e+00 : f32
    %23 = vector.broadcast %cst_17 : f32 to vector<32x128xf32>
    %24 = arith.maximumf %22, %23 : vector<32x128xf32>
    %c0_18 = arith.constant 0 : index
    %c0_19 = arith.constant 0 : index
    %25 = vector.load %arg8[%c0_18, %c0_19] : memref<32x32xbf16, #tpu.memory_space<vmem>>, vector<32x32xbf16>
    %26 = arith.truncf %24 : vector<32x128xf32> to vector<32x128xbf16>
    %cst_20 = arith.constant dense<0.000000e+00> : vector<32x128xf32>
    %27 = tpu.matmul %25, %26, %cst_20 {dimension_numbers = #tpu.dot_dimension_numbers<[1], [0], [0], [1], [0, 0, 1, 1], [], []>} : vector<32x32xbf16>, vector<32x128xbf16>, vector<32x128xf32> -> vector<32x128xf32>
    %c0_21 = arith.constant 0 : index
    %c0_22 = arith.constant 0 : index
    %28 = vector.load %arg9[%c0_21, %c0_22] : memref<32x1xf32, #tpu.memory_space<vmem>>, vector<32x1xf32>
    %29 = vector.broadcast %28 : vector<32x1xf32> to vector<32x128xf32>
    %30 = arith.addf %27, %29 : vector<32x128xf32>
    %cst_23 = arith.constant 0.000000e+00 : f32
    %31 = vector.broadcast %cst_23 : f32 to vector<32x128xf32>
    %32 = arith.maximumf %30, %31 : vector<32x128xf32>
    %c0_24 = arith.constant 0 : index
    %c0_25 = arith.constant 0 : index
    %33 = vector.load %arg10[%c0_24, %c0_25] : memref<32x32xbf16, #tpu.memory_space<vmem>>, vector<32x32xbf16>
    %34 = arith.truncf %32 : vector<32x128xf32> to vector<32x128xbf16>
    %cst_26 = arith.constant dense<0.000000e+00> : vector<32x128xf32>
    %35 = tpu.matmul %33, %34, %cst_26 {dimension_numbers = #tpu.dot_dimension_numbers<[1], [0], [0], [1], [0, 0, 1, 1], [], []>} : vector<32x32xbf16>, vector<32x128xbf16>, vector<32x128xf32> -> vector<32x128xf32>
    %c0_27 = arith.constant 0 : index
    %c0_28 = arith.constant 0 : index
    %36 = vector.load %arg11[%c0_27, %c0_28] : memref<32x1xf32, #tpu.memory_space<vmem>>, vector<32x1xf32>
    %37 = vector.broadcast %36 : vector<32x1xf32> to vector<32x128xf32>
    %38 = arith.addf %35, %37 : vector<32x128xf32>
    %cst_29 = arith.constant 0.000000e+00 : f32
    %39 = vector.broadcast %cst_29 : f32 to vector<32x128xf32>
    %40 = arith.maximumf %38, %39 : vector<32x128xf32>
    %c0_30 = arith.constant 0 : index
    %c0_31 = arith.constant 0 : index
    %41 = vector.load %arg12[%c0_30, %c0_31] : memref<4x32xbf16, #tpu.memory_space<vmem>>, vector<4x32xbf16>
    %42 = arith.truncf %40 : vector<32x128xf32> to vector<32x128xbf16>
    %cst_32 = arith.constant dense<0.000000e+00> : vector<4x128xf32>
    %43 = tpu.matmul %41, %42, %cst_32 {dimension_numbers = #tpu.dot_dimension_numbers<[1], [0], [0], [1], [0, 0, 1, 1], [], []>} : vector<4x32xbf16>, vector<32x128xbf16>, vector<4x128xf32> -> vector<4x128xf32>
    %c0_33 = arith.constant 0 : index
    %c0_34 = arith.constant 0 : index
    %44 = vector.load %arg13[%c0_33, %c0_34] : memref<4x1xf32, #tpu.memory_space<vmem>>, vector<4x1xf32>
    %45 = vector.broadcast %44 : vector<4x1xf32> to vector<4x128xf32>
    %46 = arith.addf %43, %45 : vector<4x128xf32>
    %c0_35 = arith.constant 0 : index
    %c0_36 = arith.constant 0 : index
    %47 = vector.load %arg14[%c0_35, %c0_36] : memref<4x128xf32, #tpu.memory_space<vmem>>, vector<4x128xf32>
    tpu.vector_store %arg14[%c0_35, %c0_36], %46 {strides = array<i32>} : memref<4x128xf32, #tpu.memory_space<vmem>>, vector<4x128xf32>,
    return
  }
  func.func @transform_0(%arg0: i32) -> (i32, i32) {
    %c0_i32 = arith.constant 0 : i32
    %c0_i32_0 = arith.constant 0 : i32
    return %c0_i32, %arg0 : i32, i32
  }
  func.func @transform_1(%arg0: i32) -> (i32, i32) {
    %c0_i32 = arith.constant 0 : i32
    %c0_i32_0 = arith.constant 0 : i32
    %c0_i32_1 = arith.constant 0 : i32
    return %c0_i32, %c0_i32_0 : i32, i32
  }
  func.func @transform_2(%arg0: i32) -> (i32, i32) {
    %c0_i32 = arith.constant 0 : i32
    %c0_i32_0 = arith.constant 0 : i32
    %c0_i32_1 = arith.constant 0 : i32
    return %c0_i32, %c0_i32_0 : i32, i32
  }
  func.func @transform_3(%arg0: i32) -> (i32, i32) {
    %c0_i32 = arith.constant 0 : i32
    %c0_i32_0 = arith.constant 0 : i32
    %c0_i32_1 = arith.constant 0 : i32
    return %c0_i32, %c0_i32_0 : i32, i32
  }
  func.func @transform_4(%arg0: i32) -> (i32, i32) {
    %c0_i32 = arith.constant 0 : i32
    %c0_i32_0 = arith.constant 0 : i32
    %c0_i32_1 = arith.constant 0 : i32
    return %c0_i32, %c0_i32_0 : i32, i32
  }
  func.func @transform_5(%arg0: i32) -> (i32, i32) {
    %c0_i32 = arith.constant 0 : i32
    %c0_i32_0 = arith.constant 0 : i32
    %c0_i32_1 = arith.constant 0 : i32
    return %c0_i32, %c0_i32_0 : i32, i32
  }
  func.func @transform_6(%arg0: i32) -> (i32, i32) {
    %c0_i32 = arith.constant 0 : i32
    %c0_i32_0 = arith.constant 0 : i32
    %c0_i32_1 = arith.constant 0 : i32
    return %c0_i32, %c0_i32_0 : i32, i32
  }
  func.func @transform_7(%arg0: i32) -> (i32, i32) {
    %c0_i32 = arith.constant 0 : i32
    %c0_i32_0 = arith.constant 0 : i32
    %c0_i32_1 = arith.constant 0 : i32
    return %c0_i32, %c0_i32_0 : i32, i32
  }
  func.func @transform_8(%arg0: i32) -> (i32, i32) {
    %c0_i32 = arith.constant 0 : i32
    %c0_i32_0 = arith.constant 0 : i32
    %c0_i32_1 = arith.constant 0 : i32
    return %c0_i32, %c0_i32_0 : i32, i32
  }
  func.func @transform_9(%arg0: i32) -> (i32, i32) {
    %c0_i32 = arith.constant 0 : i32
    %c0_i32_0 = arith.constant 0 : i32
    %c0_i32_1 = arith.constant 0 : i32
    return %c0_i32, %c0_i32_0 : i32, i32
  }
  func.func @transform_10(%arg0: i32) -> (i32, i32) {
    %c0_i32 = arith.constant 0 : i32
    %c0_i32_0 = arith.constant 0 : i32
    %c0_i32_1 = arith.constant 0 : i32
    return %c0_i32, %c0_i32_0 : i32, i32
  }
  func.func @transform_11(%arg0: i32) -> (i32, i32) {
    %c0_i32 = arith.constant 0 : i32
    %c0_i32_0 = arith.constant 0 : i32
    %c0_i32_1 = arith.constant 0 : i32
    return %c0_i32, %c0_i32_0 : i32, i32
  }
  func.func @transform_12(%arg0: i32) -> (i32, i32) {
    %c0_i32 = arith.constant 0 : i32
    %c0_i32_0 = arith.constant 0 : i32
    %c0_i32_1 = arith.constant 0 : i32
    return %c0_i32, %c0_i32_0 : i32, i32
  }
  func.func @transform_13(%arg0: i32) -> (i32, i32) {
    %c0_i32 = arith.constant 0 : i32
    %c0_i32_0 = arith.constant 0 : i32
    return %c0_i32, %arg0 : i32, i32
  }
}

</mosaic_0001>

<bundles_post_ra>
// kernel: extended_dqn_forward.1
= control target key start
LH: loop header
LB: loop body
LE: loop exit
PB: predicated region body
PF: predicated region fallthrough
CT: control target
= control target key end

     0   :  { %vm92_vm0 = vcmask 1043456   ;;  %vm85_vm1 = vcmask 64512   ;;  %v708_v1 = vmov 0   ;;  %vm189_vm2 = vcmask 261120   ;;  %s894_s0 = inlined_call_operand.vmem [shape: f32[8,128], index: 0, kind: input, shape index: {}]   ;;  %s895_s1 = inlined_call_operand.vmem [shape: bf16[32,8], index: 1, kind: input, shape index: {}]   ;;  %s896_s2 = inlined_call_operand.vmem [shape: f32[32,1], index: 2, kind: input, shape index: {}]   ;;  %s897_s4 = inlined_call_operand.vmem [shape: f32[32,1], index: 4, kind: input, shape index: {}]   ;;  %s898_s6 = inlined_call_operand.vmem [shape: f32[32,1], index: 6, kind: input, shape index: {}]   ;;  %s899_s8 = inlined_call_operand.vmem [shape: f32[32,1], index: 8, kind: input, shape index: {}]   ;;  %s900_s10 = inlined_call_operand.vmem [shape: f32[32,1], index: 10, kind: input, shape index: {}]   ;;  %s901_s12 = inlined_call_operand.vmem [shape: f32[4,1], index: 12, kind: input, shape index: {}]   ;;  %s902_s3 = inlined_call_operand.vmem [shape: bf16[32,32], index: 3, kind: input, shape index: {}]   ;;  %s903_s5 = inlined_call_operand.vmem [shape: bf16[32,32], index: 5, kind: input, shape index: {}]   ;;  %s904_s7 = inlined_call_operand.vmem [shape: bf16[32,32], index: 7, kind: input, shape index: {}]   ;;  %s905_s9 = inlined_call_operand.vmem [shape: bf16[32,32], index: 9, kind: input, shape index: {}]   ;;  %s906_s11 = inlined_call_operand.vmem [shape: bf16[4,32], index: 11, kind: input, shape index: {}]   ;;  %s907_s13 = inlined_call_operand.vmem [shape: f32[4,128], index: 13, kind: output, shape index: {}]  }
   0x1   :  { %v45_v0 = vld [vmem:[%s894_s0] sm:$0xff]  ;;  %696 = vset.pattern.permute.xlu0 %v708_v1  ;;  %697 = vset.pattern.permute.xlu1 %v708_v1  ;;  %v699_v6 = vld [vmem:[%s895_s1 + $0x8] sm:$0xff]   ;;  %v53_v7 = vld [vmem:[%s896_s2 + $0x10] sm:$0xff]  ;;  %vm710_vm3 = vmmov 0  }
   0x2   :  { %v50_v2 = vpack.c.bf16 %v45_v0, %v45_v0  ;;  %v698_v3 = vld [vmem:[%s895_s1] sm:$0xff]   ;;  %v52_v8 = vld [vmem:[%s896_s2 + $0x8] sm:$0xff]  ;;  %67 = vperm.xlu1 %697, %v53_v7   ;;  %v54_v9 = vld [vmem:[%s896_s2 + $0x18] sm:$0xff] }
   0x3   :  { %v51_v4 = vld [vmem:[%s896_s2] sm:$0xff]  ;;  %648 = vmatprep.mubr.msk.bf16.mxu0 %vm85_vm1, %v698_v3  ;;  %v156_v11 = vld [vmem:[%s897_s4 + $0x8] sm:$0xff]  ;;  %v157_v12 = vld [vmem:[%s897_s4 + $0x10] sm:$0xff] }
   0x4   :  { %692 = vmatprep.subr.msk.bf16.mxu0 %vm92_vm0, %v50_v2  ;;  %v94_v5 = vsel %vm92_vm0, %v50_v2, 0  ;;  %57 = vperm.xlu0 %696, %v51_v4   ;;  %v155_v10 = vld [vmem:[%s897_s4] sm:$0xff]  ;;  %v158_v13 = vld [vmem:[%s897_s4 + $0x18] sm:$0xff]  ;;  %v256_v15 = vld [vmem:[%s898_s6 + $0x8] sm:$0xff] }
   0x5   :  { %647 = vmatpush3.bf16.msra.mxu0 %v94_v5  ;;  %v255_v14 = vld [vmem:[%s898_s6] sm:$0xff]  ;;  %v257_v16 = vld [vmem:[%s898_s6 + $0x10] sm:$0xff]  ;;  %v258_v17 = vld [vmem:[%s898_s6 + $0x18] sm:$0xff] }
   0x6   :  { %72 = vperm.xlu1 %697, %v54_v9   ;;  %v354_v18 = vld [vmem:[%s899_s8] sm:$0xff]  ;;  %v355_v19 = vld [vmem:[%s899_s8 + $0x8] sm:$0xff]  ;;  %v356_v20 = vld [vmem:[%s899_s8 + $0x10] sm:$0xff] }
   0x7   :  { %v357_v21 = vld [vmem:[%s899_s8 + $0x18] sm:$0xff]  ;;  %v453_v22 = vld [vmem:[%s900_s10] sm:$0xff]  ;;  %v454_v23 = vld [vmem:[%s900_s10 + $0x8] sm:$0xff] }
   0x8   :  { %649 = vmatmul.mubr.msk.bf16.vlgmr.msra.gmra.mrb[0].mxu0 %vm85_vm1, %v699_v6  ;;  %62 = vperm.xlu0 %696, %v52_v8   ;;  %v455_v24 = vld [vmem:[%s900_s10 + $0x10] sm:$0xff]  ;;  %v456_v25 = vld [vmem:[%s900_s10 + $0x18] sm:$0xff]  ;;  %v549_v26 = vld [vmem:[%s901_s12] sm:$0xf] }
   0x9   :  { %v700_v27 = vld [vmem:[%s902_s3] sm:$0xff]   ;;  %v701_v46 = vld [vmem:[%s902_s3 + $0x8] sm:$0xff]  }
   0xa   :  { %166 = vperm.xlu1 %697, %v156_v11   ;;  %656 = vmatprep.mubr.msk.bf16.mxu1 %vm189_vm2, %v700_v27  ;;  %v702_v47 = vld [vmem:[%s903_s5] sm:$0xff]   ;;  %v703_v2 = vld [vmem:[%s903_s5 + $0x8] sm:$0xff]  }
   0xb   :  { %664 = vmatprep.mubr.msk.bf16.mxu0 %vm189_vm2, %v702_v47  ;;  %v704_v3 = vld [vmem:[%s904_s7] sm:$0xff]  }
   0xc   :  { %161 = vperm.xlu0 %696, %v155_v10  }
   0xe   :  { %176 = vperm.xlu1 %697, %v158_v13  }
  0x10   :  { %171 = vperm.xlu0 %696, %v157_v12  }
  0x12   :  { %266 = vperm.xlu1 %697, %v256_v15  }
  0x14   :  { %261 = vperm.xlu0 %696, %v255_v14  }
  0x16   :  { %276 = vperm.xlu1 %697, %v258_v17  }
  0x18   :  { %271 = vperm.xlu0 %696, %v257_v16  }
  0x1a   :  { %365 = vperm.xlu1 %697, %v355_v19  }
  0x1c   :  { %360 = vperm.xlu0 %696, %v354_v18  }
  0x1e   :  { %375 = vperm.xlu1 %697, %v357_v21  }
  0x20   :  { %370 = vperm.xlu0 %696, %v356_v20  }
  0x22   :  { %464 = vperm.xlu1 %697, %v454_v23   ;;  %v706_v23 = vld [vmem:[%s905_s9] sm:$0xff]  }
  0x24   :  { %459 = vperm.xlu0 %696, %v453_v22   ;;  %v705_v22 = vld [vmem:[%s904_s7 + $0x8] sm:$0xff]  }
  0x26   :  { %474 = vperm.xlu1 %697, %v456_v25  }
  0x28   :  { %469 = vperm.xlu0 %696, %v455_v24  }
  0x2c   :  { %552 = vperm.xlu0 %696, %v549_v26  }
  0x81   :  { %v68_v28 = vpop.permute.xlu1 %67 }
  0x83   :  { %v58_v29 = vpop.permute.xlu0 %57 }
  0x85   :  { %v73_v33 = vpop.permute.xlu1 %72 }
  0x87   :  { %v63_v36 = vpop.permute.xlu0 %62 }
  0x89   :  { %v167_v49 = vpop.permute.xlu1 %166 }
  0x8b   :  { %v162_v48 = vpop.permute.xlu0 %161 }
  0x8d   :  { %v177_v54 = vpop.permute.xlu1 %176 }
  0x8f   :  { %v172_v50 = vpop.permute.xlu0 %171 }
  0x91   :  { %v267_v5 = vpop.permute.xlu1 %266 }
  0x93   :  { %v262_v4 = vpop.permute.xlu0 %261 }
  0x95   :  { %v277_v10 = vpop.permute.xlu1 %276 }
  0x97   :  { %v272_v6 = vpop.permute.xlu0 %271 }
  0x99   :  { %v366_v25 = vpop.permute.xlu1 %365 }
  0x9b   :  { %v361_v24 = vpop.permute.xlu0 %360 }
  0x9f   :  { %v371_v26 = vpop.permute.xlu0 %370 }
  0xdb   :  { %v650_v30 = vpop.f32.mrb[0].mxu0 }
  0xdc   :  { %v139_v31 = vadd.f32 %v650_v30, %v68_v28  ;;  %v130_v32 = vpop.f32.mrb[1].mxu0  ;;  %v376_v30 = vpop.permute.xlu1 %375 }
  0xdd   :  { %v131_v34 = vadd.f32 %v130_v32, %v58_v29  ;;  %v651_v35 = vpop.f32.mrb[2].mxu0 }
  0xde   :  { %v142_v37 = vadd.f32 %v651_v35, %v73_v33  ;;  %v133_v38 = vpop.f32.mrb[3].mxu0  ;;  %v147_v40 = vmax.f32 %v139_v31, 0.0 }
  0xdf   :  { %v134_v39 = vadd.f32 %v133_v38, %v63_v36  ;;  %v145_v42 = vmax.f32 %v131_v34, 0.0 }
  0xe0   :  { %v148_v41 = vmax.f32 %v142_v37, 0.0 }
  0xe1   :  { %v146_v43 = vmax.f32 %v134_v39, 0.0 }
  0xe2   :  { %v154_v44 = vpack.c.bf16 %v148_v41, %v147_v40 }
  0xe3   :  { %v153_v45 = vpack.c.bf16 %v146_v43, %v145_v42  ;;  %v707_v42 = vld [vmem:[%s905_s9 + $0x8] sm:$0xff]   ;;  %v709_v43 = vmov 0.0  }
  0xe5   :  { %652 = vmatprep.subr.bf16.mxu1 %v153_v45 }
  0xe6   :  { %653 = vmatpush3.bf16.msra.mxu1 %v153_v45  ;;  %v465_v45 = vpop.permute.xlu1 %464 }
  0xe7   :  { %654 = vmatprep.subr.bf16.mxu1 %v154_v44 }
  0xea   :  { %655 = vmatpush3.bf16.msra.mxu1 %v154_v44  ;;  %v460_v44 = vpop.permute.xlu0 %459 }
  0xed   :  { %657 = vmatmul.mubr.msk.bf16.vlgmr.msra.gmra.mrb[0].mxu1 %vm189_vm2, %v701_v46 }
  0xee   :  { %672 = vmatprep.mubr.msk.bf16.mxu1 %vm189_vm2, %v704_v3  ;;  %v470_v46 = vpop.permute.xlu0 %469 }
 0x1c0   :  { %v658_v51 = vpop.f32.mrb[0].mxu1 }
 0x1c1   :  { %v239_v52 = vadd.f32 %v658_v51, %v172_v50  ;;  %v230_v53 = vpop.f32.mrb[1].mxu1  ;;  %v475_v50 = vpop.permute.xlu1 %474 }
 0x1c2   :  { %v231_v55 = vadd.f32 %v230_v53, %v162_v48  ;;  %v659_v56 = vpop.f32.mrb[2].mxu1 }
 0x1c3   :  { %v242_v57 = vadd.f32 %v659_v56, %v177_v54  ;;  %v233_v58 = vpop.f32.mrb[3].mxu1  ;;  %v247_v60 = vmax.f32 %v239_v52, 0.0 }
 0x1c4   :  { %v234_v59 = vadd.f32 %v233_v58, %v167_v49  ;;  %v245_v62 = vmax.f32 %v231_v55, 0.0 }
 0x1c5   :  { %v248_v61 = vmax.f32 %v242_v57, 0.0 }
 0x1c6   :  { %v246_v63 = vmax.f32 %v234_v59, 0.0 }
 0x1c7   :  { %v254_v0 = vpack.c.bf16 %v248_v61, %v247_v60 }
 0x1c8   :  { %v253_v1 = vpack.c.bf16 %v246_v63, %v245_v62  ;;  %v546_v62 = vld [vmem:[%s906_s11] sm:$0x3]  ;;  %v553_v63 = vpop.permute.xlu0 %552 }
 0x1ca   :  { %660 = vmatprep.subr.bf16.mxu0 %v253_v1 }
 0x1cb   :  { %661 = vmatpush3.bf16.msra.mxu0 %v253_v1 }
 0x1cc   :  { %662 = vmatprep.subr.bf16.mxu0 %v254_v0 }
 0x1cf   :  { %663 = vmatpush3.bf16.msra.mxu0 %v254_v0 }
 0x1d2   :  { %665 = vmatmul.mubr.msk.bf16.vlgmr.msra.gmra.mrb[4].mxu0 %vm189_vm2, %v703_v2 }
 0x1d3   :  { %680 = vmatprep.mubr.msk.bf16.mxu0 %vm189_vm2, %v706_v23 }
 0x2a5   :  { %v666_v7 = vpop.f32.mrb[4].mxu0 }
 0x2a6   :  { %v338_v8 = vadd.f32 %v666_v7, %v272_v6  ;;  %v329_v9 = vpop.f32.mrb[5].mxu0 }
 0x2a7   :  { %v330_v11 = vadd.f32 %v329_v9, %v262_v4  ;;  %v667_v12 = vpop.f32.mrb[6].mxu0 }
 0x2a8   :  { %v341_v13 = vadd.f32 %v667_v12, %v277_v10  ;;  %v332_v14 = vpop.f32.mrb[7].mxu0  ;;  %v346_v16 = vmax.f32 %v338_v8, 0.0 }
 0x2a9   :  { %v333_v15 = vadd.f32 %v332_v14, %v267_v5  ;;  %v344_v18 = vmax.f32 %v330_v11, 0.0 }
 0x2aa   :  { %v347_v17 = vmax.f32 %v341_v13, 0.0 }
 0x2ab   :  { %v345_v19 = vmax.f32 %v333_v15, 0.0 }
 0x2ac   :  { %v353_v20 = vpack.c.bf16 %v347_v17, %v346_v16 }
 0x2ad   :  { %v352_v21 = vpack.c.bf16 %v345_v19, %v344_v18 }
 0x2af   :  { %668 = vmatprep.subr.bf16.mxu1 %v352_v21 }
 0x2b0   :  { %669 = vmatpush3.bf16.msra.mxu1 %v352_v21 }
 0x2b1   :  { %670 = vmatprep.subr.bf16.mxu1 %v353_v20 }
 0x2b4   :  { %671 = vmatpush3.bf16.msra.mxu1 %v353_v20 }
 0x2b5   :  { %684 = vmatprep.subr.bf16.mxu1 %v709_v43 }
 0x2b7   :  { %673 = vmatmul.mubr.msk.bf16.vlgmr.msra.gmra.mrb[4].mxu1 %vm189_vm2, %v705_v22 }
 0x2b8   :  { %688 = vmatprep.mubr.msk.bf16.mxu1 %vm710_vm3, %v709_v43 }
 0x38a   :  { %v674_v27 = vpop.f32.mrb[4].mxu1 }
 0x38b   :  { %v437_v28 = vadd.f32 %v674_v27, %v371_v26  ;;  %v428_v29 = vpop.f32.mrb[5].mxu1 }
 0x38c   :  { %v429_v31 = vadd.f32 %v428_v29, %v361_v24  ;;  %v675_v32 = vpop.f32.mrb[6].mxu1 }
 0x38d   :  { %v440_v33 = vadd.f32 %v675_v32, %v376_v30  ;;  %v431_v34 = vpop.f32.mrb[7].mxu1  ;;  %v445_v36 = vmax.f32 %v437_v28, 0.0 }
 0x38e   :  { %v432_v35 = vadd.f32 %v431_v34, %v366_v25  ;;  %v443_v38 = vmax.f32 %v429_v31, 0.0 }
 0x38f   :  { %v446_v37 = vmax.f32 %v440_v33, 0.0 }
 0x390   :  { %v444_v39 = vmax.f32 %v432_v35, 0.0 }
 0x391   :  { %v452_v40 = vpack.c.bf16 %v446_v37, %v445_v36 }
 0x392   :  { %v451_v41 = vpack.c.bf16 %v444_v39, %v443_v38 }
 0x394   :  { %676 = vmatprep.subr.bf16.mxu0 %v451_v41 }
 0x395   :  { %677 = vmatpush3.bf16.msra.mxu0 %v451_v41 }
 0x396   :  { %678 = vmatprep.subr.bf16.mxu0 %v452_v40 }
 0x399   :  { %679 = vmatpush3.bf16.msra.mxu0 %v452_v40 }
 0x39c   :  { %681 = vmatmul.mubr.msk.bf16.vlgmr.msra.gmra.mrb[8].mxu0 %vm189_vm2, %v707_v42 }
 0x46f   :  { %v682_v47 = vpop.f32.mrb[8].mxu0 }
 0x470   :  { %v536_v48 = vadd.f32 %v682_v47, %v470_v46  ;;  %v527_v49 = vpop.f32.mrb[9].mxu0 }
 0x471   :  { %v528_v51 = vadd.f32 %v527_v49, %v460_v44  ;;  %v683_v52 = vpop.f32.mrb[10].mxu0 }
 0x472   :  { %v539_v53 = vadd.f32 %v683_v52, %v475_v50  ;;  %v530_v54 = vpop.f32.mrb[11].mxu0  ;;  %v544_v56 = vmax.f32 %v536_v48, 0.0 }
 0x473   :  { %v531_v55 = vadd.f32 %v530_v54, %v465_v45  ;;  %v542_v58 = vmax.f32 %v528_v51, 0.0 }
 0x474   :  { %v545_v57 = vmax.f32 %v539_v53, 0.0 }
 0x475   :  { %v543_v59 = vmax.f32 %v531_v55, 0.0 }
 0x476   :  { %v548_v60 = vpack.c.bf16 %v545_v57, %v544_v56 }
 0x477   :  { %v547_v61 = vpack.c.bf16 %v543_v59, %v542_v58 }
 0x479   :  { %685 = vmatpush3.bf16.msra.mxu1 %v547_v61 }
 0x47a   :  { %686 = vmatprep.subr.bf16.mxu1 %v709_v43 }
 0x47d   :  { %687 = vmatpush3.bf16.msra.mxu1 %v548_v60 }
 0x480   :  { %689 = vmatmul.mubr.msk.bf16.vlgmr.msra.gmra.mrb[8].mxu1 %vm189_vm2, %v546_v62 }
 0x553   :  { %v592_v0 = vpop.f32.mrb[8].mxu1 }
 0x554   :  { %v593_v1 = vadd.f32 %v592_v0, %v553_v63  ;;  %v690_v2 = vpop.f32.mrb[9].mxu1 }
 0x555   :  { %v595_v3 = vpop.f32.mrb[10].mxu1 }
 0x556   :  { %598 = vst [vmem:[%s907_s13] sm:$0xf] %v593_v1  ;;  %v691_v4 = vpop.f32.mrb[11].mxu1 }

</bundles_post_ra>
